<compile_context>
chip_gen: v7x
topology: tpu7x:2x2x1
jax: 0.10.0
libtpu: 0.0.40
codegen_flags: <defaults>
</compile_context>

<pallas_src>
import functools

import jax
import jax.numpy as jnp
from jax import lax
from jax.experimental import pallas as pl
from jax.experimental.pallas import tpu as pltpu

_GATE_PAD = 128          # gate columns lane-padded to a full 128-lane group


def _round_up(n, m):
    return ((n + m - 1) // m) * m


def _gelu_tanh(x):
    # tanh-approximate GELU (EUP tanh).  PyTorch nn.GELU() defaults to the
    # exact erf form (differs by <1e-3).
    # TODO(synk): switch to an erf-based GELU if exact nn.GELU parity is needed.
    c = 0.7978845608028654  # sqrt(2/pi)
    return 0.5 * x * (1.0 + jnp.tanh(c * (x + 0.044715 * x * x * x)))


# -----------------------------------------------------------------------------
# Fused MoE kernel: gate + top-k softmax routing + all experts + combine,
# one (TILE_T, D) token tile per grid step.
# -----------------------------------------------------------------------------
def _moe_kernel(x_ref, w1_ref, b1_ref, w2_ref, b2_ref, o_ref, *,
                num_experts, k, hidden_dim, use_majority_voting):
    E, H = num_experts, hidden_dim
    EH = E * H
    x = x_ref[...]                                        # (Tt, D) f32
    Tt = x.shape[0]

    # Fused layer-1 + gate matmul: bf16 operands, f32 accumulation.
    # Columns: [expert0 hidden | ... | expert(E-1) hidden | gate (lane-padded)].
    z = jnp.dot(x.astype(jnp.bfloat16), w1_ref[...],
                preferred_element_type=jnp.float32) + b1_ref[...]   # (Tt, EH+128)
    h = _gelu_tanh(z[:, :EH])                             # (Tt, EH) f32; dropout = identity

    if use_majority_voting:
        h_scaled = h * (1.0 / E)
        w_e = jnp.full((Tt, E), 1.0 / E, dtype=jnp.float32)
    else:
        gates = z[:, EH:EH + E]                           # (Tt, E) f32
        iota_e = lax.broadcasted_iota(jnp.int32, (Tt, E), 1).astype(jnp.float32)
        iota_eh = lax.broadcasted_iota(jnp.int32, (Tt, EH), 1).astype(jnp.float32)
        neg = jnp.finfo(jnp.float32).min

        remaining = gates
        sel_val, sel_idx = [], []
        for _ in range(k):                                # k tiny & static
            m = jnp.max(remaining, axis=-1, keepdims=True)           # (Tt, 1)
            # tie-break on lowest expert index (matches torch.topk ordering)
            first = jnp.min(jnp.where(remaining == m, iota_e, float(E)),
                            axis=-1, keepdims=True)                  # (Tt, 1)
            sel_val.append(m)
            sel_idx.append(first)
            remaining = jnp.where(iota_e == first, neg, remaining)

        # softmax over the k selected gate scores (sel_val[0] is the running max)
        exps = [jnp.exp(v - sel_val[0]) for v in sel_val]
        denom = exps[0]
        for ex in exps[1:]:
            denom = denom + ex
        probs = [ex / denom for ex in exps]               # each (Tt, 1)

        # Fold the combine weights straight into h: build the (Tt, EH) per-expert
        # weight broadcast with range-compares on the lane iota (no relayout),
        # plus the small (Tt, E) weights for the layer-2 bias term.
        w_bcast = jnp.zeros((Tt, EH), jnp.float32)
        w_e = jnp.zeros((Tt, E), jnp.float32)
        for j in range(k):
            lo = sel_idx[j] * float(H)
            band = (iota_eh >= lo) & (iota_eh < lo + float(H))
            w_bcast = w_bcast + jnp.where(band, probs[j], 0.0)
            w_e = w_e + jnp.where(iota_e == sel_idx[j], probs[j], 0.0)
        h_scaled = h * w_bcast

    # Single row-stacked second matmul (no zero-padded block-diagonal):
    #   sum_e w_e * (h_e @ w2_e + b2_e) == (w .* h) @ vstack(w2_e) + w @ b2
    y = jnp.dot(h_scaled.astype(jnp.bfloat16), w2_ref[...],
                preferred_element_type=jnp.float32)       # (Tt, D)
    y = y + jnp.dot(w_e, b2_ref[...], preferred_element_type=jnp.float32)
    # TODO(synk): on v5e, present a lane-dense (>=128-wide) output slab if D<128.
    o_ref[...] = y


# -----------------------------------------------------------------------------
# One-time weight packing (OUTSIDE the per-forward path)
# -----------------------------------------------------------------------------
def pack_params(params):
    """Pre-pack weights once and reuse across forward calls.

    w1aug : (D, E*H + 128) bf16 -- per-expert first layers lane-concatenated,
            gate weights in the first E of the trailing 128 lanes.
    b1aug : (1, E*H + 128) f32  -- matching biases [b1 ... | bg ... 0].
    w2s   : (E*H, D)       bf16 -- row-stacked second layers.
    b2m   : (E, D)         f32  -- second-layer biases (combined via w_e @ b2m).
    """
    E, D, H = params["w1"].shape
    EH = E * H
    w1cat = jnp.transpose(params["w1"], (1, 0, 2)).reshape(D, EH)
    gate_cols = jnp.zeros((D, _GATE_PAD), jnp.float32).at[:, :E].set(params["wg"])
    w1aug = jnp.concatenate([w1cat, gate_cols], axis=1).astype(jnp.bfloat16)

    b1cat = params["b1"].reshape(1, EH)
    bg_pad = jnp.zeros((1, _GATE_PAD), jnp.float32).at[0, :E].set(params["bg"])
    b1aug = jnp.concatenate([b1cat, bg_pad], axis=1)

    w2s = params["w2"].reshape(EH, D).astype(jnp.bfloat16)
    b2m = params["b2"]
    return {"w1aug": w1aug, "b1aug": b1aug, "w2s": w2s, "b2m": b2m,
            "num_experts": E, "hidden_dim": H, "d_model": D}


# -----------------------------------------------------------------------------
# Wrapper
# -----------------------------------------------------------------------------
def mixture_of_experts(x, packed, *, k, use_majority_voting=False, tile_t_max=512):
    """x: (B, S, D) f32 -> (B, S, D) f32, matching MixtureOfExperts.forward."""
    B, S, D = x.shape
    E, H = packed["num_experts"], packed["hidden_dim"]
    EH = E * H
    EHP = packed["w1aug"].shape[1]
    T = B * S
    xf = x.reshape(T, D)

    # Token tile: largest (<= tile_t_max) sublane-aligned tile; ~0.35us per grid
    # step, so big tiles amortize overhead while activations stay in VMEM.
    tile_t = min(tile_t_max, _round_up(T, 8))
    t_pad = _round_up(T, tile_t)
    if t_pad != T:
        xf = jnp.pad(xf, ((0, t_pad - T), (0, 0)))

    kernel = functools.partial(
        _moe_kernel, num_experts=E, k=k, hidden_dim=H,
        use_majority_voting=use_majority_voting)

    out = pl.pallas_call(
        kernel,
        out_shape=jax.ShapeDtypeStruct((t_pad, D), jnp.float32),
        grid=(t_pad // tile_t,),
        in_specs=[
            pl.BlockSpec((tile_t, D), lambda i: (i, 0)),    # x: tiled over tokens
            pl.BlockSpec((D, EHP), lambda i: (0, 0)),       # weights: constant block
            pl.BlockSpec((1, EHP), lambda i: (0, 0)),       #  index -> stay resident,
            pl.BlockSpec((EH, D), lambda i: (0, 0)),        #  no re-DMA per step
            pl.BlockSpec((E, D), lambda i: (0, 0)),
        ],
        out_specs=pl.BlockSpec((tile_t, D), lambda i: (i, 0)),
        compiler_params=pltpu.CompilerParams(
            dimension_semantics=("parallel",)),             # megacore / v7x 2-TC
    )(xf, packed["w1aug"], packed["b1aug"], packed["w2s"], packed["b2m"])
    return out[:T].reshape(B, S, D)


# -----------------------------------------------------------------------------
# Deterministic parameter init (mimics nn.Linear's U(-1/sqrt(in), +1/sqrt(in)))
# Weights stored (in, out) so the math is x @ w + b directly.
# -----------------------------------------------------------------------------
def init_params(key, input_dim, hidden_dim, num_experts):
    ks = jax.random.split(key, 6)
    bD = 1.0 / (input_dim ** 0.5)
    bH = 1.0 / (hidden_dim ** 0.5)
    wg = jax.random.uniform(ks[0], (input_dim, num_experts), jnp.float32, -bD, bD)
    bg = jax.random.uniform(ks[1], (num_experts,), jnp.float32, -bD, bD)
    w1 = jax.random.uniform(ks[2], (num_experts, input_dim, hidden_dim),
                            jnp.float32, -bD, bD)
    b1 = jax.random.uniform(ks[3], (num_experts, hidden_dim), jnp.float32, -bD, bD)
    w2 = jax.random.uniform(ks[4], (num_experts, hidden_dim, input_dim),
                            jnp.float32, -bH, bH)
    b2 = jax.random.uniform(ks[5], (num_experts, input_dim), jnp.float32, -bH, bH)
    return {"wg": wg, "bg": bg, "w1": w1, "b1": b1, "w2": w2, "b2": b2}


# -----------------------------------------------------------------------------
# Pure-JAX reference (same semantics as the PyTorch module in eval mode, with
# bf16 MXU-operand precision matching the kernel so top-k routing agrees).
# -----------------------------------------------------------------------------
def ref_forward(x, params, num_experts, k, use_majority_voting=False):
    B, S, D = x.shape
    xf = x.reshape(-1, D)

    def mm(a, b):
        return jnp.dot(a.astype(jnp.bfloat16), b.astype(jnp.bfloat16),
                       preferred_element_type=jnp.float32)

    expert_out = []
    for e in range(num_experts):
        h = _gelu_tanh(mm(xf, params["w1"][e]) + params["b1"][e])
        expert_out.append(mm(h, params["w2"][e]) + params["b2"][e])
    expert_out = jnp.stack(expert_out, axis=0)            # (E, T, D)

    if use_majority_voting:
        out = jnp.mean(expert_out, axis=0)
    else:
        gates = mm(xf, params["wg"]) + params["bg"]       # (T, E)
        scores, idx = jax.lax.top_k(gates, k)             # (T, k)
        probs = jax.nn.softmax(scores, axis=-1)
        out = jnp.zeros_like(xf)
        for e in range(num_experts):
            w_e = jnp.sum(jnp.where(idx == e, probs, 0.0), axis=-1, keepdims=True)
            out = out + w_e * expert_out[e]
    return out.reshape(B, S, D)


# -----------------------------------------------------------------------------
# Main
# -----------------------------------------------------------------------------
if __name__ == "__main__":
    batch, seq, input_dim, hidden_dim = 2, 8, 32, 64
    num_experts, topk = 4, 2

    key = jax.random.PRNGKey(0)
    kx, kp, kx2 = jax.random.split(key, 3)
    x = jax.random.normal(kx, (batch, seq, input_dim), jnp.float32)
    params = init_params(kp, input_dim, hidden_dim, num_experts)
    packed = pack_params(params)     # packed ONCE, reused by every forward

    # top-k routed path (default MoE forward)
    out = mixture_of_experts(x, packed, k=topk)
    out = jax.block_until_ready(out)
    ref = ref_forward(x, params, num_experts, topk)
    # tolerance covers bf16 operand rounding position + MXU accumulation order
    assert jnp.allclose(out, ref, atol=1e-2, rtol=1e-2), "routed MoE mismatch"

    # majority-voting path (mean over all experts)
    out_v = mixture_of_experts(x, packed, k=topk, use_majority_voting=True)
    out_v = jax.block_until_ready(out_v)
    ref_v = ref_forward(x, params, num_experts, topk, use_majority_voting=True)
    assert jnp.allclose(out_v, ref_v, atol=1e-2, rtol=1e-2), "voting MoE mismatch"

    # larger token count to exercise the multi-step "parallel" token grid
    x_big = jax.random.normal(kx2, (8, 128, input_dim), jnp.float32)
    out_big = jax.block_until_ready(mixture_of_experts(x_big, packed, k=topk))
    ref_big = ref_forward(x_big, params, num_experts, topk)
    assert jnp.allclose(out_big, ref_big, atol=1e-2, rtol=1e-2), "tiled MoE mismatch"

    print("KERNEL_OK")
</pallas_src>

<mosaic_0001>
module attributes {stable_mosaic.version = 11 : i64} {
  func.func @_moe_kernel(%arg0: i32, %arg1: memref<16x32xf32, #tpu.memory_space<vmem>>, %arg2: memref<32x384xbf16, #tpu.memory_space<vmem>>, %arg3: memref<1x384xf32, #tpu.memory_space<vmem>>, %arg4: memref<256x32xbf16, #tpu.memory_space<vmem>>, %arg5: memref<4x32xf32, #tpu.memory_space<vmem>>, %arg6: memref<16x32xf32, #tpu.memory_space<vmem>>) attributes {dimension_semantics = [#tpu.dimension_semantics<parallel>], iteration_bounds = array<i64: 1>, scalar_prefetch = 0 : i64, scratch_operands = 0 : i64, tpu.core_type = #tpu.core_type<tc>, window_params = [{transform_indices = @transform_0, window_bounds = array<i64: 16, 32>}, {pipeline_mode = #tpu.pipeline_mode<synchronous>, transform_indices = @transform_1, window_bounds = array<i64: 32, 384>}, {pipeline_mode = #tpu.pipeline_mode<synchronous>, transform_indices = @transform_2, window_bounds = array<i64: 1, 384>}, {pipeline_mode = #tpu.pipeline_mode<synchronous>, transform_indices = @transform_3, window_bounds = array<i64: 256, 32>}, {pipeline_mode = #tpu.pipeline_mode<synchronous>, transform_indices = @transform_4, window_bounds = array<i64: 4, 32>}, {transform_indices = @transform_5, window_bounds = array<i64: 16, 32>}]} {
    %c0 = arith.constant 0 : index
    %c0_0 = arith.constant 0 : index
    %0 = vector.load %arg1[%c0, %c0_0] : memref<16x32xf32, #tpu.memory_space<vmem>>, vector<16x32xf32>
    %1 = arith.truncf %0 : vector<16x32xf32> to vector<16x32xbf16>
    %c0_1 = arith.constant 0 : index
    %c0_2 = arith.constant 0 : index
    %2 = vector.load %arg2[%c0_1, %c0_2] : memref<32x384xbf16, #tpu.memory_space<vmem>>, vector<32x384xbf16>
    %cst = arith.constant dense<0.000000e+00> : vector<16x384xf32>
    %3 = tpu.matmul %1, %2, %cst {dimension_numbers = #tpu.dot_dimension_numbers<[1], [0], [0], [1], [0, 0, 1, 1], [], []>} : vector<16x32xbf16>, vector<32x384xbf16>, vector<16x384xf32> -> vector<16x384xf32>
    %c0_3 = arith.constant 0 : index
    %c0_4 = arith.constant 0 : index
    %4 = vector.load %arg3[%c0_3, %c0_4] : memref<1x384xf32, #tpu.memory_space<vmem>>, vector<1x384xf32>
    %5 = vector.broadcast %4 : vector<1x384xf32> to vector<16x384xf32>
    %6 = arith.addf %3, %5 : vector<16x384xf32>
    %7 = vector.extract_strided_slice %6 {offsets = [0, 0], sizes = [16, 256], strides = [1, 1]} : vector<16x384xf32> to vector<16x256xf32>
    %cst_5 = arith.constant 5.000000e-01 : f32
    %8 = vector.broadcast %cst_5 : f32 to vector<16x256xf32>
    %9 = arith.mulf %8, %7 : vector<16x256xf32>
    %cst_6 = arith.constant 4.471500e-02 : f32
    %10 = vector.broadcast %cst_6 : f32 to vector<16x256xf32>
    %11 = arith.mulf %10, %7 : vector<16x256xf32>
    %12 = arith.mulf %11, %7 : vector<16x256xf32>
    %13 = arith.mulf %12, %7 : vector<16x256xf32>
    %14 = arith.addf %7, %13 : vector<16x256xf32>
    %cst_7 = arith.constant 0.797884583 : f32
    %15 = vector.broadcast %cst_7 : f32 to vector<16x256xf32>
    %16 = arith.mulf %15, %14 : vector<16x256xf32>
    %17 = math.tanh %16 : vector<16x256xf32>
    %cst_8 = arith.constant 1.000000e+00 : f32
    %18 = vector.broadcast %cst_8 : f32 to vector<16x256xf32>
    %19 = arith.addf %18, %17 : vector<16x256xf32>
    %20 = arith.mulf %9, %19 : vector<16x256xf32>
    %21 = vector.extract_strided_slice %6 {offsets = [0, 256], sizes = [16, 4], strides = [1, 1]} : vector<16x384xf32> to vector<16x4xf32>
    %22 = tpu.iota {dimensions = array<i32: 1>} : vector<16x4xi32>
    %23 = arith.sitofp %22 : vector<16x4xi32> to vector<16x4xf32>
    %24 = tpu.iota {dimensions = array<i32: 1>} : vector<16x256xi32>
    %25 = arith.sitofp %24 : vector<16x256xi32> to vector<16x256xf32>
    %cst_9 = arith.constant dense<0xFF800000> : vector<16xf32>
    %26 = vector.multi_reduction <maximumf>, %21, %cst_9 [1] : vector<16x4xf32> to vector<16xf32>
    %27 = vector.shape_cast %26 : vector<16xf32> to vector<16x1xf32>
    %28 = vector.broadcast %27 : vector<16x1xf32> to vector<16x4xf32>
    %29 = arith.cmpf oeq, %21, %28 : vector<16x4xf32>
    %cst_10 = arith.constant 4.000000e+00 : f32
    %30 = vector.broadcast %cst_10 : f32 to vector<16x4xf32>
    %31 = arith.select %29, %23, %30 : vector<16x4xi1>, vector<16x4xf32>
    %cst_11 = arith.constant dense<0x7F800000> : vector<16xf32>
    %32 = vector.multi_reduction <minimumf>, %31, %cst_11 [1] : vector<16x4xf32> to vector<16xf32>
    %33 = vector.shape_cast %32 : vector<16xf32> to vector<16x1xf32>
    %34 = vector.broadcast %33 : vector<16x1xf32> to vector<16x4xf32>
    %35 = arith.cmpf oeq, %23, %34 : vector<16x4xf32>
    %cst_12 = arith.constant -3.40282347E+38 : f32
    %36 = vector.broadcast %cst_12 : f32 to vector<16x4xf32>
    %37 = arith.select %35, %36, %21 : vector<16x4xi1>, vector<16x4xf32>
    %cst_13 = arith.constant dense<0xFF800000> : vector<16xf32>
    %38 = vector.multi_reduction <maximumf>, %37, %cst_13 [1] : vector<16x4xf32> to vector<16xf32>
    %39 = vector.shape_cast %38 : vector<16xf32> to vector<16x1xf32>
    %40 = vector.broadcast %39 : vector<16x1xf32> to vector<16x4xf32>
    %41 = arith.cmpf oeq, %37, %40 : vector<16x4xf32>
    %cst_14 = arith.constant 4.000000e+00 : f32
    %42 = vector.broadcast %cst_14 : f32 to vector<16x4xf32>
    %43 = arith.select %41, %23, %42 : vector<16x4xi1>, vector<16x4xf32>
    %cst_15 = arith.constant dense<0x7F800000> : vector<16xf32>
    %44 = vector.multi_reduction <minimumf>, %43, %cst_15 [1] : vector<16x4xf32> to vector<16xf32>
    %45 = vector.shape_cast %44 : vector<16xf32> to vector<16x1xf32>
    %46 = arith.subf %27, %27 : vector<16x1xf32>
    %47 = math.exp %46 : vector<16x1xf32>
    %48 = arith.subf %39, %27 : vector<16x1xf32>
    %49 = math.exp %48 : vector<16x1xf32>
    %50 = arith.addf %47, %49 : vector<16x1xf32>
    %51 = arith.divf %47, %50 : vector<16x1xf32>
    %52 = arith.divf %49, %50 : vector<16x1xf32>
    %cst_16 = arith.constant 0.000000e+00 : f32
    %53 = vector.broadcast %cst_16 : f32 to vector<16x256xf32>
    %cst_17 = arith.constant 0.000000e+00 : f32
    %54 = vector.broadcast %cst_17 : f32 to vector<16x4xf32>
    %cst_18 = arith.constant 6.400000e+01 : f32
    %55 = vector.broadcast %cst_18 : f32 to vector<16x1xf32>
    %56 = arith.mulf %33, %55 : vector<16x1xf32>
    %57 = vector.broadcast %56 : vector<16x1xf32> to vector<16x256xf32>
    %58 = arith.cmpf oge, %25, %57 : vector<16x256xf32>
    %cst_19 = arith.constant 6.400000e+01 : f32
    %59 = vector.broadcast %cst_19 : f32 to vector<16x1xf32>
    %60 = arith.addf %56, %59 : vector<16x1xf32>
    %61 = vector.broadcast %60 : vector<16x1xf32> to vector<16x256xf32>
    %62 = arith.cmpf olt, %25, %61 : vector<16x256xf32>
    %63 = arith.andi %58, %62 : vector<16x256xi1>
    %cst_20 = arith.constant 0.000000e+00 : f32
    %64 = vector.shape_cast %51 : vector<16x1xf32> to vector<16x1xf32>
    %65 = vector.broadcast %64 : vector<16x1xf32> to vector<16x256xf32>
    %66 = vector.broadcast %cst_20 : f32 to vector<16x256xf32>
    %67 = arith.select %63, %65, %66 : vector<16x256xi1>, vector<16x256xf32>
    %68 = arith.addf %53, %67 : vector<16x256xf32>
    %69 = vector.broadcast %33 : vector<16x1xf32> to vector<16x4xf32>
    %70 = arith.cmpf oeq, %23, %69 : vector<16x4xf32>
    %cst_21 = arith.constant 0.000000e+00 : f32
    %71 = vector.shape_cast %51 : vector<16x1xf32> to vector<16x1xf32>
    %72 = vector.broadcast %71 : vector<16x1xf32> to vector<16x4xf32>
    %73 = vector.broadcast %cst_21 : f32 to vector<16x4xf32>
    %74 = arith.select %70, %72, %73 : vector<16x4xi1>, vector<16x4xf32>
    %75 = arith.addf %54, %74 : vector<16x4xf32>
    %cst_22 = arith.constant 6.400000e+01 : f32
    %76 = vector.broadcast %cst_22 : f32 to vector<16x1xf32>
    %77 = arith.mulf %45, %76 : vector<16x1xf32>
    %78 = vector.broadcast %77 : vector<16x1xf32> to vector<16x256xf32>
    %79 = arith.cmpf oge, %25, %78 : vector<16x256xf32>
    %cst_23 = arith.constant 6.400000e+01 : f32
    %80 = vector.broadcast %cst_23 : f32 to vector<16x1xf32>
    %81 = arith.addf %77, %80 : vector<16x1xf32>
    %82 = vector.broadcast %81 : vector<16x1xf32> to vector<16x256xf32>
    %83 = arith.cmpf olt, %25, %82 : vector<16x256xf32>
    %84 = arith.andi %79, %83 : vector<16x256xi1>
    %cst_24 = arith.constant 0.000000e+00 : f32
    %85 = vector.shape_cast %52 : vector<16x1xf32> to vector<16x1xf32>
    %86 = vector.broadcast %85 : vector<16x1xf32> to vector<16x256xf32>
    %87 = vector.broadcast %cst_24 : f32 to vector<16x256xf32>
    %88 = arith.select %84, %86, %87 : vector<16x256xi1>, vector<16x256xf32>
    %89 = arith.addf %68, %88 : vector<16x256xf32>
    %90 = vector.broadcast %45 : vector<16x1xf32> to vector<16x4xf32>
    %91 = arith.cmpf oeq, %23, %90 : vector<16x4xf32>
    %cst_25 = arith.constant 0.000000e+00 : f32
    %92 = vector.shape_cast %52 : vector<16x1xf32> to vector<16x1xf32>
    %93 = vector.broadcast %92 : vector<16x1xf32> to vector<16x4xf32>
    %94 = vector.broadcast %cst_25 : f32 to vector<16x4xf32>
    %95 = arith.select %91, %93, %94 : vector<16x4xi1>, vector<16x4xf32>
    %96 = arith.addf %75, %95 : vector<16x4xf32>
    %97 = arith.mulf %20, %89 : vector<16x256xf32>
    %98 = arith.truncf %97 : vector<16x256xf32> to vector<16x256xbf16>
    %c0_26 = arith.constant 0 : index
    %c0_27 = arith.constant 0 : index
    %99 = vector.load %arg4[%c0_26, %c0_27] : memref<256x32xbf16, #tpu.memory_space<vmem>>, vector<256x32xbf16>
    %cst_28 = arith.constant dense<0.000000e+00> : vector<16x32xf32>
    %100 = tpu.matmul %98, %99, %cst_28 {dimension_numbers = #tpu.dot_dimension_numbers<[1], [0], [0], [1], [0, 0, 1, 1], [], []>} : vector<16x256xbf16>, vector<256x32xbf16>, vector<16x32xf32> -> vector<16x32xf32>
    %c0_29 = arith.constant 0 : index
    %c0_30 = arith.constant 0 : index
    %101 = vector.load %arg5[%c0_29, %c0_30] : memref<4x32xf32, #tpu.memory_space<vmem>>, vector<4x32xf32>
    %cst_31 = arith.constant dense<0.000000e+00> : vector<16x32xf32>
    %102 = tpu.matmul %96, %101, %cst_31 {dimension_numbers = #tpu.dot_dimension_numbers<[1], [0], [0], [1], [0, 0, 1, 1], [], []>} : vector<16x4xf32>, vector<4x32xf32>, vector<16x32xf32> -> vector<16x32xf32>
    %103 = arith.addf %100, %102 : vector<16x32xf32>
    %c0_32 = arith.constant 0 : index
    %c0_33 = arith.constant 0 : index
    %104 = vector.load %arg6[%c0_32, %c0_33] : memref<16x32xf32, #tpu.memory_space<vmem>>, vector<16x32xf32>
    tpu.vector_store %arg6[%c0_32, %c0_33], %103 {strides = array<i32>} : memref<16x32xf32, #tpu.memory_space<vmem>>, vector<16x32xf32>,
    return
  }
  func.func @transform_0(%arg0: i32) -> (i32, i32) {
    %c0_i32 = arith.constant 0 : i32
    %c0_i32_0 = arith.constant 0 : i32
    return %arg0, %c0_i32 : i32, i32
  }
  func.func @transform_1(%arg0: i32) -> (i32, i32) {
    %c0_i32 = arith.constant 0 : i32
    %c0_i32_0 = arith.constant 0 : i32
    %c0_i32_1 = arith.constant 0 : i32
    return %c0_i32, %c0_i32_0 : i32, i32
  }
  func.func @transform_2(%arg0: i32) -> (i32, i32) {
    %c0_i32 = arith.constant 0 : i32
    %c0_i32_0 = arith.constant 0 : i32
    %c0_i32_1 = arith.constant 0 : i32
    return %c0_i32, %c0_i32_0 : i32, i32
  }
  func.func @transform_3(%arg0: i32) -> (i32, i32) {
    %c0_i32 = arith.constant 0 : i32
    %c0_i32_0 = arith.constant 0 : i32
    %c0_i32_1 = arith.constant 0 : i32
    return %c0_i32, %c0_i32_0 : i32, i32
  }
  func.func @transform_4(%arg0: i32) -> (i32, i32) {
    %c0_i32 = arith.constant 0 : i32
    %c0_i32_0 = arith.constant 0 : i32
    %c0_i32_1 = arith.constant 0 : i32
    return %c0_i32, %c0_i32_0 : i32, i32
  }
  func.func @transform_5(%arg0: i32) -> (i32, i32) {
    %c0_i32 = arith.constant 0 : i32
    %c0_i32_0 = arith.constant 0 : i32
    return %arg0, %c0_i32 : i32, i32
  }
}

</mosaic_0001>

<bundles_post_ra>
// kernel: tpu_custom_call.1
= control target key start
LH: loop header
LB: loop body
LE: loop exit
PB: predicated region body
PF: predicated region fallthrough
CT: control target
= control target key end

     0   :  { %v747_v2 = vmov 0   ;;  %vm1028_vm0 = vcmask 261120   ;;  %v748_v9 = vmov 0.0   ;;  %vm749_vm1 = vmmov 0   ;;  %s1022_s0 = inlined_call_operand.vmem [shape: f32[16,32], index: 0, kind: input, shape index: {}]   ;;  %s1023_s1 = inlined_call_operand.vmem [shape: bf16[32,384], index: 1, kind: input, shape index: {}]   ;;  %s1024_s2 = inlined_call_operand.vmem [shape: f32[1,384], index: 2, kind: input, shape index: {}]   ;;  %s1025_s3 = inlined_call_operand.vmem [shape: bf16[256,32], index: 3, kind: input, shape index: {}]   ;;  %s1026_s4 = inlined_call_operand.vmem [shape: f32[4,32], index: 4, kind: input, shape index: {}]   ;;  %s1027_s5 = inlined_call_operand.hbm [shape: f32[16,32], index: 5, kind: output, shape index: {}]  }
   0x1   :  { %v679_v0 = vld [vmem:[%s1023_s1 + $0x4] ss:$12 sps:$4 sm:$0xff]   ;;  %v681_v1 = vld [vmem:[%s1023_s1] ss:$12 sps:$4 sm:$0xff]   ;;  %118 = vmatprep.mubr.bf16.mxu0 %v747_v2  ;;  %v682_v3 = vld [vmem:[%s1023_s1 + $0x1c] ss:$12 sps:$4 sm:$0xff]  }
   0x2   :  { %86 = vmatprep.subr.bf16.mxu0 %v679_v0  ;;  %v684_v4 = vld [vmem:[%s1023_s1 + $0x18] ss:$12 sps:$4 sm:$0xff]   ;;  %v23_v6 = vld [vmem:[%s1022_s0 + $0x8] sm:$0xff] }
   0x3   :  { %v22_v5 = vld [vmem:[%s1022_s0] sm:$0xff]  ;;  %87 = vmatpush1.bf16.msra.mxu0 %v681_v1  ;;  %v685_v7 = vld [vmem:[%s1023_s1 + $0x8] ss:$12 sps:$4 sm:$0xff]  }
   0x4   :  { %88 = vmatprep.subr.bf16.mxu0 %v682_v3  ;;  %v24_v8 = vpack.c.bf16 %v23_v6, %v22_v5  ;;  %v686_v10 = vld [vmem:[%s1023_s1 + $0x20] ss:$12 sps:$4 sm:$0xff]  }
   0x7   :  { %89 = vmatpush1.bf16.msra.mxu0 %v684_v4 }
   0x8   :  { %660 = vmatprep.subr.bf16.mxu0 %v748_v9 }
   0xa   :  { %611 = vmatmul.mubr.msk.bf16.vlgmr.msra.gmra.mrb[0].mxu0 %vm1028_vm0, %v24_v8 }
   0xb   :  { %661 = vmatpush3.bf16.msra.mxu0 %v685_v7  ;;  %664 = vmatprep.mubr.msk.bf16.mxu0 %vm749_vm1, %v748_v9 }
   0xc   :  { %662 = vmatprep.subr.bf16.mxu0 %v748_v9 }
   0xf   :  { %663 = vmatpush3.bf16.msra.mxu0 %v686_v10 }
  0x10   :  { %10 = vsyncpa [#allocation3], 0  ;;  %v35_v11 = vlaneseq  ;;  %v823_v18 = vld [vmem:[%s1024_s2] sm:$0x7]  ;;  %vm211_vm2 = vcmask 31744   ;;  %v689_v49 = vld [vmem:[%s1025_s3 + $0x48] sm:$0xff]  }
  0x11   :  { %v687_v47 = vld [vmem:[%s1025_s3 + $0x40] sm:$0xff]   ;;  %v690_v50 = vld [vmem:[%s1025_s3 + $0x8] sm:$0xff]   ;;  %v691_v51 = vld [vmem:[%s1025_s3 + $0x50] sm:$0xff]   ;;  %vm371_vm12 = vcmask 1043456  }
  0x12   :  { %665 = vmatmul.mubr.msk.bf16.vlgmr.msra.gmra.mrb[4].mxu0 %vm1028_vm0, %v24_v8  ;;  %v809_v12 = vshrl.u32 %v35_v11, 7  ;;  %v207_v28 = vand.u32 127, %v35_v11  ;;  %v688_v48 = vld [vmem:[%s1025_s3] sm:$0xff]   ;;  %638 = vmatprep.subr.bf16.mxu1 %v687_v47  ;;  %v692_v52 = vld [vmem:[%s1025_s3 + $0x10] sm:$0xff]   ;;  %v693_v53 = vld [vmem:[%s1025_s3 + $0x58] sm:$0xff]  }
  0x13   :  { %639 = vmatpush3.bf16.msra.mxu1 %v688_v48  ;;  %v694_v54 = vld [vmem:[%s1025_s3 + $0x18] sm:$0xff]   ;;  %v695_v61 = vld [vmem:[%s1025_s3 + $0x60] sm:$0xff]   ;;  %v697_v63 = vld [vmem:[%s1025_s3 + $0x68] sm:$0xff]  }
  0x14   :  { %v45_v15 = vsub.s32 2, %v809_v12  ;;  %v828_v29 = vcvt.s32.f32 %v207_v28  ;;  %v209_v36 = vadd.s32 128, %v207_v28  ;;  %640 = vmatprep.subr.bf16.mxu1 %v689_v49  ;;  %v696_v62 = vld [vmem:[%s1025_s3 + $0x20] sm:$0xff]   ;;  %v698_v1 = vld [vmem:[%s1025_s3 + $0x28] sm:$0xff]   ;;  %v699_v2 = vld [vmem:[%s1025_s3 + $0x70] sm:$0xff]   ;;  %v37_v6 = vsub.s32 0, %v809_v12 }
  0x15   :  { %v364_v0 = vld [vmem:[%s1026_s4] sm:$0xf]  ;;  %v700_v3 = vld [vmem:[%s1025_s3 + $0x30] sm:$0xff]   ;;  %v701_v4 = vld [vmem:[%s1025_s3 + $0x78] sm:$0xff]   ;;  %v41_v7 = vsub.s32 1, %v809_v12 }
  0x16   :  { %v46_v19 = vrot.slane %v823_v18, %v45_v15  ;;  %v840_v37 = vcvt.s32.f32 %v209_v36  ;;  %668 = vmatprep.subr.msk.mxu0 %vm371_vm12, %v364_v0  ;;  %v702_v5 = vld [vmem:[%s1025_s3 + $0x38] sm:$0xff]   ;;  %v38_v8 = vrot.slane %v823_v18, %v37_v6  ;;  %s750_s3 = smov [#allocation2]  }
  0x17   :  { %641 = vmatpush3.bf16.msra.mxu1 %v690_v50  ;;  %669 = vmatpush3.msk.msra.mxu0 %vm371_vm12, %v364_v0  ;;  %v42_v9 = vrot.slane %v823_v18, %v41_v7  ;;  %s594_s13 = sshll.u32 %s750_s3, 4  ;;  %s595_s13 = int_to_ptr.vmem [resolvable:$true] %s594_s13 }
  0x18   :  { %642 = vmatprep.subr.bf16.mxu1 %v691_v51  ;;  %s723_s14 = scalar_lea.vmem %s595_s13, 256  ;;  %p728_p1 = scmp.lt.s32.totalorder %s595_s13, %s595_s13 }
  0x19   :  { %p724_p0 = scmp.ne.s32.totalorder %s595_s13, %s723_s14  ;;  %p729_p2 = scmp.lt.s32.totalorder %s723_s14, %s723_s14 }
  0x1b   :  { %643 = vmatpush3.bf16.msra.mxu1 %v692_v52  ;;  %p730_p3 = por %p729_p2, %p728_p1 }
  0x1c   :  { %644 = vmatprep.subr.bf16.mxu1 %v693_v53 }
  0x1d   :  { %p731_p4 = pnand %p730_p3, %p724_p0 }
  0x1f   :  { %645 = vmatpush3.bf16.msra.mxu1 %v694_v54 }
  0x20   :  { %646 = vmatprep.subr.bf16.mxu1 %v695_v61 }
  0x23   :  { %647 = vmatpush3.bf16.msra.mxu1 %v696_v62 }
  0x24   :  { %648 = vmatprep.subr.bf16.mxu1 %v697_v63 }
  0x27   :  { %649 = vmatpush3.bf16.msra.mxu1 %v698_v1 }
  0x28   :  { %650 = vmatprep.subr.bf16.mxu1 %v699_v2 }
  0x2b   :  { %651 = vmatpush3.bf16.msra.mxu1 %v700_v3 }
  0x2c   :  { %652 = vmatprep.subr.bf16.mxu1 %v701_v4 }
  0x2f   :  { %653 = vmatpush3.bf16.msra.mxu1 %v702_v5 }
  0xdd   :  { %v811_v13 = vpop.f32.mrb[0].mxu0 }
  0xde   :  { %v813_v14 = vpop.f32.mrb[1].mxu0  ;;  %v121_v10 = vadd.f32 %v811_v13, %v38_v8 }
  0xdf   :  { %v816_v16 = vpop.f32.mrb[2].mxu0  ;;  %v123_v11 = vadd.f32 %v813_v14, %v42_v9 }
  0xe0   :  { %v818_v17 = vpop.f32.mrb[3].mxu0  ;;  %v170_v0 = vmul.f32 0.5, %v121_v10 }
  0xe1   :  { %v940_v12 = vadd.f32 %v818_v17, %v42_v9  ;;  %v171_v5 = vmul.f32 0.5, %v123_v11 }
  0xe5   :  { %v163_v20 = vpop.f32.mrb[4].mxu0 }
  0xe6   :  { %v164_v21 = vadd.f32 %v163_v20, %v46_v19  ;;  %v666_v22 = vpop.f32.mrb[5].mxu0  ;;  %v174_v20 = vmul.f32 0.044715, %v121_v10 }
  0xe7   :  { %v166_v23 = vpop.f32.mrb[6].mxu0  ;;  %v175_v22 = vmul.f32 0.044715, %v123_v11 }
  0xe8   :  { %v167_v24 = vadd.f32 %v166_v23, %v46_v19  ;;  %v667_v25 = vpop.f32.mrb[7].mxu0  ;;  %v212_v26 = vsel %vm211_vm2, %v164_v21, -inf  ;;  %v178_v13 = vmul.f32 %v174_v20, %v121_v10 }
  0xe9   :  { %213 = vmax.xlane.f32.xlu0 %v212_v26  ;;  %v179_v26 = vmul.f32 %v175_v22, %v123_v11 }
  0xea   :  { %v215_v27 = vsel %vm211_vm2, %v167_v24, -inf  ;;  %v182_v28 = vmul.f32 %v178_v13, %v121_v10 }
  0xed   :  { %216 = vmax.xlane.f32.xlu0 %v215_v27  ;;  %v177_v27 = vmul.f32 0.044715, %v940_v12 }
 0x176   :  { %v830_v30 = vpop.xlane.xlu0 %213 }
 0x177   :  { %vm218_vm3 = vcmp.eq.f32.partialorder %v164_v21, %v830_v30  ;;  %v248_v19 = vsub.f32 %v830_v30, %v830_v30 }
 0x178   :  { %v220_v31 = vsel %vm218_vm3, %v828_v29, 4.0 }
 0x179   :  { %v222_v32 = vsel %vm211_vm2, %v220_v31, inf  ;;  %v181_v31 = vmul.f32 %v177_v27, %v940_v12 }
 0x17a   :  { %223 = vmin.xlane.f32.xlu1 %v222_v32  ;;  %v835_v33 = vpop.xlane.xlu0 %216  ;;  %v183_v32 = vmul.f32 %v179_v26, %v123_v11 }
 0x17b   :  { %vm219_vm4 = vcmp.eq.f32.partialorder %v167_v24, %v835_v33  ;;  %v249_v25 = vsub.f32 %v835_v33, %v835_v33 }
 0x17c   :  { %v221_v34 = vsel %vm219_vm4, %v828_v29, 4.0  ;;  %v187_v36 = vadd.f32 %v183_v32, %v123_v11 }
 0x17d   :  { %v225_v35 = vsel %vm211_vm2, %v221_v34, inf  ;;  %v186_v34 = vadd.f32 %v182_v28, %v121_v10 }
 0x17e   :  { %226 = vmin.xlane.f32.xlu1 %v225_v35  ;;  %v191_v48 = vmul.f32 0.7978846, %v187_v36 }
 0x207   :  { %v842_v38 = vpop.xlane.xlu1 %223 }
 0x208   :  { %vm228_vm5 = vcmp.eq.f32.partialorder %v828_v29, %v842_v38  ;;  %v847_v39 = vmul.f32 64.0, %v842_v38 }
 0x209   :  { %v230_v40 = vsel %vm228_vm5, -3.4028235e+38, %v164_v21  ;;  %v937_v21 = vadd.f32 %v816_v16, %v38_v8 }
 0x20a   :  { %vm271_vm6 = vcmp.ge.f32.partialorder %v840_v37, %v847_v39  ;;  %v855_v41 = vadd.f32 64.0, %v847_v39  ;;  %v232_v42 = vsel %vm211_vm2, %v230_v40, -inf  ;;  %vm270_vm15 = vcmp.ge.f32.partialorder %v828_v29, %v847_v39 }
 0x20b   :  { %233 = vmax.xlane.f32.xlu0 %v232_v42  ;;  %v858_v43 = vpop.xlane.xlu1 %226  ;;  %v176_v14 = vmul.f32 0.044715, %v937_v21  ;;  %v172_v46 = vmul.f32 0.5, %v937_v21 }
 0x20c   :  { %vm229_vm7 = vcmp.eq.f32.partialorder %v828_v29, %v858_v43  ;;  %vm277_vm8 = vcmp.lt.f32.partialorder %v840_v37, %v855_v41  ;;  %vm276_vm14 = vcmp.lt.f32.partialorder %v828_v29, %v855_v41 }
 0x20d   :  { %v231_v44 = vsel %vm229_vm7, -3.4028235e+38, %v167_v24  ;;  %vm868_vm9 = vmand %vm271_vm6, %vm277_vm8  ;;  %v250_v24 = vmul.f32 1.442695, %v248_v19  ;;  %v180_v17 = vmul.f32 %v176_v14, %v937_v21 }
 0x20e   :  { %v235_v45 = vsel %vm211_vm2, %v231_v44, -inf  ;;  %vm965_vm6 = vmand %vm270_vm15, %vm276_vm14 }
 0x20f   :  { %236 = vmax.xlane.f32.xlu1 %v235_v45  ;;  %v184_v35 = vmul.f32 %v180_v17, %v937_v21 }
 0x211   :  { %v188_v42 = vadd.f32 %v184_v35, %v937_v21 }
 0x213   :  { %v192_v51 = vmul.f32 0.7978846, %v188_v42 }
 0x298   :  { %v234_v55 = vpop.xlane.xlu0 %233 }
 0x299   :  { %vm238_vm10 = vcmp.eq.f32.partialorder %v230_v40, %v234_v55  ;;  %v254_v15 = vsub.f32 %v234_v55, %v830_v30  ;;  %v252_v30 = vmul.f32 1.442695, %v249_v25 }
 0x29a   :  { %v240_v56 = vsel %vm238_vm10, %v828_v29, 4.0 }
 0x29b   :  { %v242_v57 = vsel %vm211_vm2, %v240_v56, inf  ;;  %v256_v23 = vmul.f32 1.442695, %v254_v15 }
 0x29c   :  { %v237_v58 = vpop.xlane.xlu1 %236  ;;  %243 = vmin.xlane.f32.xlu0 %v242_v57 }
 0x29d   :  { %vm239_vm11 = vcmp.eq.f32.partialorder %v231_v44, %v237_v58  ;;  %v255_v18 = vsub.f32 %v237_v58, %v835_v33  ;;  %703 = vpow2.f32 %v256_v23  ;;  %v185_v33 = vmul.f32 %v181_v31, %v940_v12 }
 0x29e   :  { %v241_v59 = vsel %vm239_vm11, %v828_v29, 4.0  ;;  %705 = vpow2.f32 %v250_v24  ;;  %v190_v44 = vmul.f32 0.7978846, %v186_v34  ;;  %v269_v58 = vmul.f32 64.0, %v858_v43 }
 0x29f   :  { %v245_v60 = vsel %vm211_vm2, %v241_v59, inf  ;;  %v258_v16 = vmul.f32 1.442695, %v255_v18  ;;  %v189_v47 = vadd.f32 %v185_v33, %v940_v12 }
 0x2a0   :  { %246 = vmin.xlane.f32.xlu1 %v245_v60  ;;  %v275_v2 = vadd.f32 64.0, %v269_v58  ;;  %vm272_vm1 = vcmp.ge.f32.partialorder %v828_v29, %v269_v58  ;;  %vm273_vm11 = vcmp.ge.f32.partialorder %v840_v37, %v269_v58 }
 0x2a1   :  { %707 = vpow2.f32 %v258_v16  ;;  %v193_v52 = vmul.f32 0.7978846, %v189_v47 }
 0x2a2   :  { %709 = vpow2.f32 %v252_v30  ;;  %vm278_vm3 = vcmp.lt.f32.partialorder %v828_v29, %v275_v2  ;;  %vm279_vm14 = vcmp.lt.f32.partialorder %v840_v37, %v275_v2 }
 0x2a3   :  { %711 = vtanh.f32 %v190_v44  ;;  %vm985_vm0 = vmand %vm272_vm1, %vm278_vm3 }
 0x2a4   :  { %713 = vtanh.f32 %v191_v48 }
 0x2a7   :  { %v704_v40 = vpop.eup %703 }
 0x2a8   :  { %v706_v45 = vpop.eup %705 }
 0x2a9   :  { %v260_v49 = vadd.f32 %v706_v45, %v704_v40 }
 0x2ab   :  { %v708_v50 = vpop.eup %707  ;;  %715 = vrcp.f32 %v260_v49 }
 0x2ac   :  { %v710_v53 = vpop.eup %709  ;;  %717 = vtanh.f32 %v192_v51 }
 0x2ad   :  { %v261_v54 = vadd.f32 %v710_v53, %v708_v50  ;;  %719 = vtanh.f32 %v193_v52  ;;  %v712_v55 = vpop.eup %711 }
 0x2ae   :  { %v714_v56 = vpop.eup %713  ;;  %v198_v60 = vadd.f32 1.0, %v712_v55 }
 0x2af   :  { %721 = vrcp.f32 %v261_v54  ;;  %v199_v63 = vadd.f32 1.0, %v714_v56 }
 0x2b0   :  { %v202_v9 = vmul.f32 %v198_v60, %v170_v0 }
 0x2b1   :  { %v203_v10 = vmul.f32 %v199_v63, %v171_v5 }
 0x2b5   :  { %v716_v57 = vpop.eup %715 }
 0x2b6   :  { %v718_v59 = vpop.eup %717  ;;  %v263_v62 = vmul.f32 %v716_v57, %v706_v45  ;;  %v266_v3 = vmul.f32 %v716_v57, %v704_v40 }
 0x2b7   :  { %v720_v61 = vpop.eup %719  ;;  %v200_v6 = vadd.f32 1.0, %v718_v59 }
 0x2b8   :  { %v201_v8 = vadd.f32 1.0, %v720_v61  ;;  %v292_v15 = vsel %vm228_vm5, %v263_v62, 0.0  ;;  %v284_v25 = vsel %vm965_vm6, %v263_v62, 0.0  ;;  %v285_v16 = vsel %vm868_vm9, %v263_v62, 0.0  ;;  %vm995_vm6 = vmand %vm273_vm11, %vm279_vm14 }
 0x2b9   :  { %v722_v1 = vpop.eup %721  ;;  %v204_v40 = vmul.f32 %v200_v6, %v172_v46 }
 0x2ba   :  { %v265_v22 = vmul.f32 %v722_v1, %v710_v53  ;;  %v267_v23 = vmul.f32 %v722_v1, %v708_v50 }
 0x2bc   :  { %v293_v13 = vsel %vm229_vm7, %v265_v22, 0.0  ;;  %v286_v35 = vsel %vm985_vm0, %v265_v22, 0.0  ;;  %v287_v33 = vsel %vm995_vm6, %v265_v22, 0.0  ;;  %vm1037_vm0 = vcmask 261120  }
 0x329   :  { %v244_v4 = vpop.xlane.xlu0 %243 }
 0x32a   :  { %v296_v7 = vmul.f32 64.0, %v244_v4  ;;  %vm320_vm13 = vcmp.eq.f32.partialorder %v828_v29, %v244_v4 }
 0x32b   :  { %v322_v19 = vsel %vm320_vm13, %v266_v3, 0.0 }
 0x32c   :  { %v302_v20 = vadd.f32 64.0, %v296_v7  ;;  %v324_v11 = vadd.f32 %v322_v19, %v292_v15  ;;  %vm298_vm4 = vcmp.ge.f32.partialorder %v828_v29, %v296_v7  ;;  %vm299_vm12 = vcmp.ge.f32.partialorder %v840_v37, %v296_v7 }
 0x32d   :  { %v247_v41 = vpop.xlane.xlu1 %246 }
 0x32e   :  { %vm304_vm5 = vcmp.lt.f32.partialorder %v828_v29, %v302_v20  ;;  %v297_v38 = vmul.f32 64.0, %v247_v41  ;;  %vm321_vm8 = vcmp.eq.f32.partialorder %v828_v29, %v247_v41  ;;  %670 = vmatprep.mubr.msk.f32.mxu0 %vm211_vm2, %v324_v11  ;;  %vm305_vm10 = vcmp.lt.f32.partialorder %v840_v37, %v302_v20 }
 0x32f   :  { %vm308_vm13 = vmand %vm298_vm4, %vm304_vm5  ;;  %v323_v39 = vsel %vm321_vm8, %v267_v23, 0.0 }
 0x330   :  { %v312_v24 = vsel %vm308_vm13, %v266_v3, 0.0  ;;  %v303_v14 = vadd.f32 64.0, %v297_v38  ;;  %vm309_vm15 = vmand %vm299_vm12, %vm305_vm10  ;;  %v325_v27 = vadd.f32 %v323_v39, %v293_v13  ;;  %vm300_vm7 = vcmp.ge.f32.partialorder %v828_v29, %v297_v38 }
 0x331   :  { %v313_v28 = vsel %vm309_vm15, %v266_v3, 0.0  ;;  %v316_v43 = vadd.f32 %v312_v24, %v284_v25  ;;  %vm301_vm3 = vcmp.ge.f32.partialorder %v840_v37, %v297_v38 }
 0x332   :  { %vm306_vm4 = vcmp.lt.f32.partialorder %v828_v29, %v303_v14  ;;  %vm307_vm1 = vcmp.lt.f32.partialorder %v840_v37, %v303_v14  ;;  %v317_v30 = vadd.f32 %v313_v28, %v285_v16  ;;  %671 = vmatmul.mubr.msk.f32.vlgmr.msra.gmra.mrb[8].mxu0 %vm211_vm2, %v325_v27  ;;  %v173_v29 = vmul.f32 0.5, %v940_v12  ;;  %vm1038_vm2 = vmmov %vm1037_vm0 }
 0x333   :  { %vm310_vm5 = vmand %vm300_vm7, %vm306_vm4  ;;  %v326_v31 = vmul.f32 %v316_v43, %v202_v9 }
 0x334   :  { %v314_v32 = vsel %vm310_vm5, %v267_v23, 0.0  ;;  %vm311_vm9 = vmand %vm301_vm3, %vm307_vm1  ;;  %v327_v34 = vmul.f32 %v317_v30, %v203_v10  ;;  %v205_v42 = vmul.f32 %v201_v8, %v173_v29 }
 0x335   :  { %v315_v36 = vsel %vm311_vm9, %v267_v23, 0.0  ;;  %v318_v37 = vadd.f32 %v314_v32, %v286_v35 }
 0x336   :  { %v319_v44 = vadd.f32 %v315_v36, %v287_v33 }
 0x337   :  { %v328_v45 = vmul.f32 %v318_v37, %v204_v40 }
 0x338   :  { %v329_v47 = vmul.f32 %v319_v44, %v205_v42 }
 0x339   :  { %v330_v21 = vpack.c.bf16 %v328_v45, %v326_v31 }
 0x33a   :  { %v331_v48 = vpack.c.bf16 %v329_v47, %v327_v34 }
 0x33c   :  { %578 = vmatprep.mubr.bf16.mxu1 %v331_v48 }
 0x33d   :  { %579 = vmatmul.mubr.bf16.vlgmr.msra.gmra.mrb[0].mxu1 %v330_v21 }
 0x405   :  { %v672_v12 = vpop.f32.mrb[8].mxu0 }
 0x406   :  { %v441_v49 = vpop.f32.mrb[9].mxu0 }
 0x410   :  { %v654_v50 = vpop.f32.mrb[0].mxu1 }
 0x411   :  { %v655_v51 = vpop.f32.mrb[1].mxu1 }
 0x412   :  { %v656_v52 = vadd.f32 %v655_v51, %v654_v50  ;;  %v657_v53 = vpop.f32.mrb[2].mxu1 }
 0x413   :  { %v658_v54 = vpop.f32.mrb[3].mxu1 }
 0x414   :  { %v581_v55 = vadd.f32 %v656_v52, %v441_v49  ;;  %v659_v56 = vadd.f32 %v658_v54, %v657_v53 }
 0x416   :  { %587 = vst.msk [vmem:[#allocation2] sm:$0xff] %vm1037_vm0, %v581_v55  ;;  %v584_v57 = vadd.f32 %v672_v12, %v659_v56 }
 0x418   :  { %588 = vst.msk [vmem:[#allocation2 + $0x8] sm:$0xff] %vm1038_vm2, %v584_v57 }
 0x419   :  { %734 = shalt.err (!%p731_p4)
}
 0x41a   :  { %s735_s17 = scalar_lea.hbm %s1027_s5, 256 }
 0x41b   :  { %p736_p5 = scmp.ne.s32.totalorder %s1027_s5, %s735_s17  ;;  %p739_p6 = scmp.lt.u32.totalorder %s735_s17, %s1027_s5 }
 0x41d   :  { %p741_p7 = pnand %p739_p6, %p736_p5 }
 0x41f   :  { %744 = shalt.err (!%p741_p7)
}
 0x420   :  { %s751_s22 = smov 128   ;;  %s752_s23 = smov 8  }
 0x421   :  { %600 = dma.vmem_to_hbm [thread:$0]  %s595_s13, 256, %s1027_s5, [#allocation3], %s751_s22, %s751_s22, %s752_s23  }
 0x422   :  { %745 = dma.done.wait [#allocation3], 256  }
 0x423   :  { %746 = vsyncadd [#allocation3], 4294967040 }
 0x424   :  { %604 = vsyncpa [#allocation3], 1 }

</bundles_post_ra>
